<compile_context>
chip_gen: v7x
topology: tpu7x:2x2x1
jax: 0.10.0
libtpu: 0.0.40
codegen_flags: <defaults>
</compile_context>

<pallas_src>
from bisect import bisect_left, bisect_right

import numpy as np
import jax
import jax.numpy as jnp
from jax import lax
from jax.experimental import pallas as pl
from jax.experimental.pallas import tpu as pltpu


# ----------------------------------------------------------------------------
# Pallas kernels
# ----------------------------------------------------------------------------

def _row_head_kernel(enc_ref, w_ref, b_ref, out_ref):
    """Fused per-token head: logits = enc @ [w_ss|w_se|w_os|w_oe|pad] + b.

    enc_ref: (tile, hidden) bf16, w_ref: (hidden, 128) bf16, b_ref: (1, 128) f32,
    out_ref: (tile, 128) bf16 logits (no sigmoid in-kernel; applied host-side
    on the useful columns only).
    """
    logits = jnp.dot(enc_ref[...], w_ref[...],
                     preferred_element_type=jnp.float32) + b_ref[...]
    out_ref[...] = logits.astype(out_ref.dtype)


def _span_object_kernel(bidx_ref, sidx_ref, eidx_ref, nact_ref,
                        base_ref, b_ref, out_ref):
    """Per-span object/relation head, matmul-free.

    For span s in sentence bidx[s]:
      subj@W + b*wsum = sum_rows( sel * base ),  sel = 0.5 at start/end rows
      logits = base + (subj@W) = base + row_sum - b*wsum
    base_ref: (seq_l, 128) bf16 (this sentence's row-head output),
    b_ref: (1, 128) f32, out_ref: (seq_l, 128) bf16 logits.
    Padded spans (s >= n_actual) are skipped entirely.
    """
    s = pl.program_id(0)

    @pl.when(s < nact_ref[0])
    def _():
        si = sidx_ref[s]
        ei = eidx_ref[s]
        base = base_ref[...].astype(jnp.float32)               # (seq_l, P)
        ids = lax.broadcasted_iota(jnp.int32, base.shape, 0)
        # Exactly the torch `mapping` row: 0.5 at start, 0.5 at end
        # (a single 0.5 if start == end).
        sel = jnp.where(jnp.logical_or(ids == si, ids == ei), 0.5, 0.0)
        subj_w = jnp.sum(base * sel, axis=0, keepdims=True)    # (1, P)
        wsum = jnp.sum(sel, axis=0, keepdims=True)              # (1, P), const cols
        logits = base + (subj_w - b_ref[...] * wsum)             # broadcast add
        out_ref[...] = logits.astype(out_ref.dtype)


# ----------------------------------------------------------------------------
# Pallas wrappers
# ----------------------------------------------------------------------------

def _round_up(x, m):
    return ((x + m - 1) // m) * m


def row_head_pallas(enc, w_fused, b_fused):
    """enc (bsz, seq_l, hidden) bf16 -> (bsz, seq_l, P) bf16 fused logits."""
    bsz, seq_l, hidden = enc.shape
    P = w_fused.shape[1]
    n = bsz * seq_l
    # Fixed large tile (512) + row padding: avoids the old divisor-search
    # collapsing to tiny tiles for awkward row counts.
    tile = min(512, _round_up(n, 8))
    n_pad = _round_up(n, tile)
    x = enc.reshape(n, hidden)
    if n_pad != n:
        x = jnp.pad(x, ((0, n_pad - n), (0, 0)))

    out = pl.pallas_call(
        _row_head_kernel,
        out_shape=jax.ShapeDtypeStruct((n_pad, P), jnp.bfloat16),
        grid=(n_pad // tile,),
        in_specs=[
            pl.BlockSpec((tile, hidden), lambda i: (i, 0)),
            pl.BlockSpec((hidden, P), lambda i: (0, 0)),
            pl.BlockSpec((1, P), lambda i: (0, 0)),
        ],
        out_specs=pl.BlockSpec((tile, P), lambda i: (i, 0)),
        compiler_params=pltpu.CompilerParams(
            dimension_semantics=("parallel",),
            vmem_limit_bytes=32 * 1024 * 1024),
    )(x, w_fused, b_fused)

    return out[:n].reshape(bsz, seq_l, P)


def object_span_pallas(batch_idx, start_idx, end_idx, n_actual, base, b_fused):
    """Per-span object logits from the precomputed base.

    batch_idx/start_idx/end_idx: int32 (n_bucket,) scalar-prefetch arrays;
    n_actual: int32 (1,). base: (bsz, seq_l, P) bf16. Returns
    (n_bucket, seq_l, P) bf16 logits; cols [2:2+R]=object_start,
    [2+R:2+2R]=object_end.
    """
    bsz, seq_l, P = base.shape
    n_bucket = batch_idx.shape[0]

    return pl.pallas_call(
        _span_object_kernel,
        out_shape=jax.ShapeDtypeStruct((n_bucket, seq_l, P), jnp.bfloat16),
        grid_spec=pltpu.PrefetchScalarGridSpec(
            num_scalar_prefetch=4,
            grid=(n_bucket,),
            in_specs=[
                # base block chosen by the span's sentence id; spans are
                # sorted by sentence so consecutive identical block indices
                # reuse the DMA.
                pl.BlockSpec((None, seq_l, P),
                             lambda s, bi, si, ei, na: (bi[s], 0, 0)),
                pl.BlockSpec((1, P), lambda s, bi, si, ei, na: (0, 0)),
            ],
            out_specs=pl.BlockSpec((None, seq_l, P),
                                   lambda s, bi, si, ei, na: (s, 0, 0)),
        ),
        compiler_params=pltpu.CompilerParams(
            dimension_semantics=("arbitrary",),   # keep base-block DMA reuse
            vmem_limit_bytes=32 * 1024 * 1024),
    )(batch_idx, start_idx, end_idx, n_actual, base, b_fused)


# ----------------------------------------------------------------------------
# Host-side glue replicating CASREL2.forward semantics
# ----------------------------------------------------------------------------

def argument_span_determination(binary_start, binary_end, prob_start, prob_end):
    """Greedy CasRel-style span decoding (data-dependent, host-side)."""
    spans, seq_l, i = [], len(binary_start), 0
    while i < seq_l:
        if binary_start[i]:
            for j in range(i, seq_l):
                if binary_end[j]:
                    spans.append((i, j))
                    i = j
                    break
        i += 1
    return spans


class CasRel2Jax:
    hparams = {'relation_cnt': 1, 'threshold': 0.5, 'use_mask': False}

    def __init__(self, hidden_size, relation_cnt, vocab_size, key):
        self.hidden_size = hidden_size
        self.relation_cnt = relation_cnt
        self.hparams = dict(CasRel2Jax.hparams, relation_cnt=relation_cnt)

        def xavier(k, fan_in, fan_out):
            bound = float(np.sqrt(6.0 / (fan_in + fan_out)))
            return jax.random.uniform(k, (fan_in, fan_out), jnp.float32,
                                      -bound, bound)

        ks = jax.random.split(key, 5)
        H, R = hidden_size, relation_cnt

        # Individual head weights (same init scheme as the PyTorch module).
        w_ss = xavier(ks[0], H, 1)
        w_se = xavier(ks[1], H, 1)
        w_os = xavier(ks[2], H, R)
        w_oe = xavier(ks[3], H, R)

        # One fused, lane-padded (128) weight covering all four heads.
        # Column layout: [0]=subj_start, [1]=subj_end, [2:2+R]=obj_start,
        # [2+R:2+2R]=obj_end, rest zero.
        P = _round_up(2 + 2 * R, 128)
        w_all = jnp.zeros((H, P), jnp.float32)
        w_all = (w_all.at[:, 0:1].set(w_ss)
                      .at[:, 1:2].set(w_se)
                      .at[:, 2:2 + R].set(w_os)
                      .at[:, 2 + R:2 + 2 * R].set(w_oe))
        self.P = P
        self.w_all_fused = w_all.astype(jnp.bfloat16)          # bf16 MXU operand
        self.b_all_fused = jnp.zeros((1, P), jnp.float32)       # biases init to 0

        # TODO(synk): BERT encoder has no clean single-kernel Pallas equivalent
        # here; replaced by a deterministic (bf16) embedding lookup.
        self.embedding = jax.random.normal(
            ks[4], (vocab_size, H), jnp.float32).astype(jnp.bfloat16)

    # --- encoder stand-in ---------------------------------------------------
    def get_encoded_text(self, input_ids, token_type_ids, attention_mask):
        encoded_text = self.embedding[input_ids]            # (bsz, seq_l, H) bf16
        mask = (1 - attention_mask).astype(bool)
        return encoded_text, mask

    # --- fused row head (subject logits + object base) ------------------------
    def _run_row_head(self, encoded_text):
        return row_head_pallas(encoded_text, self.w_all_fused, self.b_all_fused)

    # --- subject head ----------------------------------------------------------
    def get_subjects(self, encoded_text, mask=None, base=None):
        if base is None:
            base = self._run_row_head(encoded_text)
        subj_logits = base[..., 0:2].astype(jnp.float32)        # only useful cols
        start_prob = jax.nn.sigmoid(subj_logits[..., 0:1])
        end_prob = jax.nn.sigmoid(subj_logits[..., 1:2])
        if mask is not None and self.hparams['use_mask']:
            start_prob = jnp.where(mask[..., None], 0.0, start_prob)
            end_prob = jnp.where(mask[..., None], 0.0, end_prob)
        return start_prob, end_prob

    # --- object heads (per span, matmul-free span kernel) ----------------------
    def _object_heads(self, batch_idx, start_idx, end_idx, base):
        n = len(batch_idx)
        n_bucket = _round_up(max(n, 1), 8)      # stable bucketed shapes
        pad = n_bucket - n
        bi = jnp.asarray(list(batch_idx) + [0] * pad, jnp.int32)
        si = jnp.asarray(list(start_idx) + [0] * pad, jnp.int32)
        ei = jnp.asarray(list(end_idx) + [0] * pad, jnp.int32)
        nact = jnp.asarray([n], jnp.int32)
        out = object_span_pallas(bi, si, ei, nact, base, self.b_all_fused)
        R = self.relation_cnt
        obj = jax.nn.sigmoid(out[:n, :, 2:2 + 2 * R].astype(jnp.float32))
        return obj[..., 0:R], obj[..., R:2 * R]

    def get_object_for_specific_index(self, indexes, encoded_text, mask=None,
                                      base=None):
        """indexes: list[(start, end)], one span per sentence of encoded_text."""
        if base is None:
            base = self._run_row_head(encoded_text)
        cbsz = len(indexes)
        bidx = list(range(cbsz))
        sidx = [v[0] for v in indexes]
        eidx = [v[1] for v in indexes]
        return self._object_heads(bidx, sidx, eidx, base)

    def get_object_for_indexes(self, indexes, encoded_text, mask=None,
                               base=None):
        bsz = len(indexes)
        tagged_indexes = []
        for i, e in enumerate(indexes):
            tagged_indexes.extend((i, x[0], x[1]) for x in e)
        if len(tagged_indexes) == 0:
            return [None] * bsz, [None] * bsz
        if base is None:
            base = self._run_row_head(encoded_text)

        bidx = [t[0] for t in tagged_indexes]
        sidx = [t[1] for t in tagged_indexes]
        eidx = [t[2] for t in tagged_indexes]
        start, end = self._object_heads(bidx, sidx, eidx, base)

        index_list = bidx
        start_decoded, end_decoded = [], []
        for i in range(bsz):
            r = (bisect_left(index_list, i), bisect_right(index_list, i))
            start_decoded.append(start[r[0]:r[1]] if r[0] != r[1] else None)
            end_decoded.append(end[r[0]:r[1]] if r[0] != r[1] else None)
        return start_decoded, end_decoded

    # --- span decoding (host, data-dependent) ----------------------------------
    def find_subject_spans(self, start, end):
        thr = self.hparams['threshold']
        start = np.asarray(start)
        end = np.asarray(end)
        s_map = (start > thr).astype(int).tolist()
        e_map = (end > thr).astype(int).tolist()
        bsz = start.shape[0]
        spans = []
        for i in range(bsz):
            spans.append(argument_span_determination(
                s_map[i], e_map[i], start[i].tolist(), end[i].tolist()))
        return spans

    # --- forward ----------------------------------------------------------------
    def forward(self, input_ids, token_type_ids, attention_mask):
        encoded_text, mask = self.get_encoded_text(
            input_ids, token_type_ids, attention_mask)
        base = self._run_row_head(encoded_text)              # one fused matmul pass
        subject_start, subject_end = self.get_subjects(encoded_text, base=base)
        # squeeze only the trailing unit dim (keeps (1, seq_l) for bsz==1)
        subject_start = jnp.squeeze(subject_start, axis=-1)  # (bsz, seq_l)
        subject_end = jnp.squeeze(subject_end, axis=-1)
        spans = self.find_subject_spans(subject_start, subject_end)
        object_start, object_end = self.get_object_for_indexes(
            spans, encoded_text, base=base)
        return {'subject_spans': spans,
                'object_start': object_start,
                'object_end': object_end,
                'mask': mask}


# ----------------------------------------------------------------------------
# Main
# ----------------------------------------------------------------------------

if __name__ == "__main__":
    bsz, seq_l, hidden, rel_cnt, vocab = 2, 8, 32, 1, 50

    key = jax.random.PRNGKey(0)
    k_model, k_ids = jax.random.split(key)

    model = CasRel2Jax(hidden_size=hidden, relation_cnt=rel_cnt,
                       vocab_size=vocab, key=k_model)

    input_ids = jax.random.randint(k_ids, (bsz, seq_l), 0, vocab)
    token_type_ids = jnp.zeros((bsz, seq_l), jnp.int32)
    attention_mask = jnp.ones((bsz, seq_l), jnp.int32)

    out = model.forward(input_ids, token_type_ids, attention_mask)

    # Block on everything produced.
    jax.block_until_ready(out['mask'])
    for o in (out['object_start'] or []):
        if o is not None:
            jax.block_until_ready(o)
    for o in (out['object_end'] or []):
        if o is not None:
            jax.block_until_ready(o)

    # If no subject span crossed the threshold, still exercise the span kernel
    # once with a demo span (same semantics as get_object_for_specific_index).
    if all(o is None for o in out['object_start']):
        enc, _ = model.get_encoded_text(input_ids, token_type_ids,
                                        attention_mask)
        demo_os, demo_oe = model.get_object_for_specific_index(
            [(0, min(3, seq_l - 1))] * bsz, enc)
        jax.block_until_ready((demo_os, demo_oe))

    print("KERNEL_OK")
</pallas_src>

<mosaic_0001>
module attributes {stable_mosaic.version = 11 : i64} {
  func.func @_row_head_kernel(%arg0: i32, %arg1: memref<16x32xbf16, #tpu.memory_space<vmem>>, %arg2: memref<32x128xbf16, #tpu.memory_space<vmem>>, %arg3: memref<1x128xf32, #tpu.memory_space<vmem>>, %arg4: memref<16x128xbf16, #tpu.memory_space<vmem>>) attributes {dimension_semantics = [#tpu.dimension_semantics<parallel>], iteration_bounds = array<i64: 1>, scalar_prefetch = 0 : i64, scratch_operands = 0 : i64, tpu.core_type = #tpu.core_type<tc>, window_params = [{transform_indices = @transform_0, window_bounds = array<i64: 16, 32>}, {pipeline_mode = #tpu.pipeline_mode<synchronous>, transform_indices = @transform_1, window_bounds = array<i64: 32, 128>}, {pipeline_mode = #tpu.pipeline_mode<synchronous>, transform_indices = @transform_2, window_bounds = array<i64: 1, 128>}, {transform_indices = @transform_3, window_bounds = array<i64: 16, 128>}]} {
    %c0 = arith.constant 0 : index
    %c0_0 = arith.constant 0 : index
    %0 = vector.load %arg1[%c0, %c0_0] : memref<16x32xbf16, #tpu.memory_space<vmem>>, vector<16x32xbf16>
    %c0_1 = arith.constant 0 : index
    %c0_2 = arith.constant 0 : index
    %1 = vector.load %arg2[%c0_1, %c0_2] : memref<32x128xbf16, #tpu.memory_space<vmem>>, vector<32x128xbf16>
    %cst = arith.constant dense<0.000000e+00> : vector<16x128xf32>
    %2 = tpu.matmul %0, %1, %cst {dimension_numbers = #tpu.dot_dimension_numbers<[1], [0], [0], [1], [0, 0, 1, 1], [], []>} : vector<16x32xbf16>, vector<32x128xbf16>, vector<16x128xf32> -> vector<16x128xf32>
    %c0_3 = arith.constant 0 : index
    %c0_4 = arith.constant 0 : index
    %3 = vector.load %arg3[%c0_3, %c0_4] : memref<1x128xf32, #tpu.memory_space<vmem>>, vector<1x128xf32>
    %4 = vector.broadcast %3 : vector<1x128xf32> to vector<16x128xf32>
    %5 = arith.addf %2, %4 : vector<16x128xf32>
    %6 = arith.truncf %5 : vector<16x128xf32> to vector<16x128xbf16>
    %c0_5 = arith.constant 0 : index
    %c0_6 = arith.constant 0 : index
    %7 = vector.load %arg4[%c0_5, %c0_6] : memref<16x128xbf16, #tpu.memory_space<vmem>>, vector<16x128xbf16>
    tpu.vector_store %arg4[%c0_5, %c0_6], %6 {strides = array<i32>} : memref<16x128xbf16, #tpu.memory_space<vmem>>, vector<16x128xbf16>,
    return
  }
  func.func @transform_0(%arg0: i32) -> (i32, i32) {
    %c0_i32 = arith.constant 0 : i32
    %c0_i32_0 = arith.constant 0 : i32
    return %arg0, %c0_i32 : i32, i32
  }
  func.func @transform_1(%arg0: i32) -> (i32, i32) {
    %c0_i32 = arith.constant 0 : i32
    %c0_i32_0 = arith.constant 0 : i32
    %c0_i32_1 = arith.constant 0 : i32
    return %c0_i32, %c0_i32_0 : i32, i32
  }
  func.func @transform_2(%arg0: i32) -> (i32, i32) {
    %c0_i32 = arith.constant 0 : i32
    %c0_i32_0 = arith.constant 0 : i32
    %c0_i32_1 = arith.constant 0 : i32
    return %c0_i32, %c0_i32_0 : i32, i32
  }
  func.func @transform_3(%arg0: i32) -> (i32, i32) {
    %c0_i32 = arith.constant 0 : i32
    %c0_i32_0 = arith.constant 0 : i32
    return %arg0, %c0_i32 : i32, i32
  }
}

</mosaic_0001>

<bundles_post_ra>
// kernel: tpu_custom_call.1
= control target key start
LH: loop header
LB: loop body
LE: loop exit
PB: predicated region body
PF: predicated region fallthrough
CT: control target
= control target key end

     0   :  { %8 = vsyncpa [#allocation3], 0  ;;  %s329_s0 = inlined_call_operand.hbm [shape: bf16[16,32], index: 0, kind: input, shape index: {}]   ;;  %s330_s1 = inlined_call_operand.hbm [shape: bf16[32,128], index: 1, kind: input, shape index: {}]   ;;  %s331_s2 = inlined_call_operand.vmem [shape: f32[1,128], index: 2, kind: input, shape index: {}]   ;;  %s332_s3 = inlined_call_operand.hbm [shape: bf16[16,128], index: 3, kind: output, shape index: {}]  }
   0x1   :  { %9 = vsyncpa [#allocation6], 0 }
   0x2   :  { %10 = vsyncpa [#allocation4], 0  ;;  %s254_s12 = smov [#allocation2]   ;;  %s182_s16 = scalar_lea.hbm %s329_s0, 128 }
   0x3   :  { %s16_s13 = sshll.u32 %s254_s12, 4  ;;  %p183_p0 = scmp.ne.s32.totalorder %s329_s0, %s182_s16  ;;  %s17_s13 = int_to_ptr.vmem [resolvable:$true] %s16_s13 }
   0x4   :  { %p186_p1 = scmp.lt.u32.totalorder %s182_s16, %s329_s0 }
   0x6   :  { %p188_p2 = pnand %p186_p1, %p183_p0 }
   0x8   :  { %191 = shalt.err (!%p188_p2)
}
   0x9   :  { %s192_s21 = scalar_lea.vmem %s17_s13, 128  ;;  %p197_p4 = scmp.lt.s32.totalorder %s17_s13, %s17_s13 }
   0xa   :  { %p193_p3 = scmp.ne.s32.totalorder %s17_s13, %s192_s21  ;;  %p198_p5 = scmp.lt.s32.totalorder %s192_s21, %s192_s21 }
   0xc   :  { %p199_p6 = por %p198_p5, %p197_p4 }
   0xe   :  { %p200_p7 = pnand %p199_p6, %p193_p3 }
  0x10   :  { %203 = shalt.err (!%p200_p7)
}
  0x11   :  { %s255_s22 = smov 64   ;;  %s256_s23 = smov 4  }
  0x12   :  { %22 = dma.hbm_to_vmem [thread:$0]  %s329_s0, 128, %s17_s13, [#allocation3], %s255_s22, %s255_s22, %s256_s23  }
  0x13   :  { %s257_s26 = smov [#allocation5]   ;;  %s204_s30 = scalar_lea.hbm %s330_s1, 256 }
  0x14   :  { %s28_s27 = sshll.u32 %s257_s26, 4  ;;  %p205_p8 = scmp.ne.s32.totalorder %s330_s1, %s204_s30  ;;  %s29_s27 = int_to_ptr.vmem [resolvable:$true] %s28_s27 }
  0x15   :  { %p208_p9 = scmp.lt.u32.totalorder %s204_s30, %s330_s1 }
  0x17   :  { %p210_p10 = pnand %p208_p9, %p205_p8 }
  0x19   :  { %213 = shalt.err (!%p210_p10)
}
  0x1a   :  { %s214_s8 = scalar_lea.vmem %s29_s27, 256  ;;  %p219_p12 = scmp.lt.s32.totalorder %s29_s27, %s29_s27 }
  0x1b   :  { %p215_p11 = scmp.ne.s32.totalorder %s29_s27, %s214_s8  ;;  %p220_p13 = scmp.lt.s32.totalorder %s214_s8, %s214_s8 }
  0x1d   :  { %p221_p0 = por %p220_p13, %p219_p12 }
  0x1f   :  { %p222_p1 = pnand %p221_p0, %p215_p11 }
  0x21   :  { %225 = shalt.err (!%p222_p1)
}
  0x22   :  { %34 = dma.hbm_to_vmem [thread:$0]  %s330_s1, 256, %s29_s27, [#allocation6], %s255_s22, %s255_s22, %s256_s23  }
  0x23   :  { %248 = dma.done.wait [#allocation3], 128  }
  0x24   :  { %249 = vsyncadd [#allocation3], 4294967168 }
  0x25   :  { %250 = dma.done.wait [#allocation6], 256  }
  0x26   :  { %251 = vsyncadd [#allocation6], 4294967040  ;;  %v258_v0 = vmov 0.0   ;;  %vm259_vm0 = vmmov 0   ;;  %v179_v1 = vld [vmem:[#allocation5] sm:$0xff]   ;;  %v180_v2 = vld [vmem:[#allocation5 + $0x8] sm:$0xff]  }
  0x27   :  { %164 = vmatprep.subr.bf16.mxu0 %v258_v0  ;;  %168 = vmatprep.mubr.msk.bf16.mxu0 %vm259_vm0, %v258_v0  ;;  %v181_v3 = vld [vmem:[#allocation2] sm:$0xff]   ;;  %vm74_vm1 = vcmask 261120   ;;  %s260_s1 = smov [#allocation7]  }
  0x28   :  { %165 = vmatpush3.bf16.msra.mxu0 %v179_v1  ;;  %v147_v4 = vld [vmem:[%s331_s2] ss:$0 sm:$0xff]  ;;  %s134_s12 = sshll.u32 %s260_s1, 4  ;;  %s135_s12 = int_to_ptr.vmem [resolvable:$true] %s134_s12 }
  0x29   :  { %166 = vmatprep.subr.bf16.mxu0 %v258_v0  ;;  %s226_s13 = scalar_lea.vmem %s135_s12, 128  ;;  %p231_p3 = scmp.lt.s32.totalorder %s135_s12, %s135_s12 }
  0x2a   :  { %p227_p2 = scmp.ne.s32.totalorder %s135_s12, %s226_s13  ;;  %p232_p4 = scmp.lt.s32.totalorder %s226_s13, %s226_s13 }
  0x2c   :  { %167 = vmatpush3.bf16.msra.mxu0 %v180_v2  ;;  %p233_p5 = por %p232_p4, %p231_p3 }
  0x2e   :  { %p234_p6 = pnand %p233_p5, %p227_p2 }
  0x2f   :  { %169 = vmatmul.mubr.msk.bf16.vlgmr.msra.gmra.mrb[0].mxu0 %vm74_vm1, %v181_v3 }
 0x102   :  { %v112_v5 = vpop.f32.mrb[0].mxu0 }
 0x103   :  { %v170_v6 = vpop.f32.mrb[1].mxu0  ;;  %v113_v8 = vadd.f32 %v147_v4, %v112_v5 }
 0x104   :  { %v115_v7 = vpop.f32.mrb[2].mxu0 }
 0x105   :  { %v116_v9 = vadd.f32 %v147_v4, %v115_v7  ;;  %v171_v10 = vpop.f32.mrb[3].mxu0 }
 0x107   :  { %v159_v11 = vpack.c.bf16 %v116_v9, %v113_v8 }
 0x109   :  { %160 = vst [vmem:[#allocation7] sm:$0xff] %v159_v11  }
 0x10a   :  { %237 = shalt.err (!%p234_p6)
}
 0x10b   :  { %s238_s15 = scalar_lea.hbm %s332_s3, 128 }
 0x10c   :  { %p239_p7 = scmp.ne.s32.totalorder %s332_s3, %s238_s15  ;;  %p242_p8 = scmp.lt.u32.totalorder %s238_s15, %s332_s3 }
 0x10e   :  { %p244_p9 = pnand %p242_p8, %p239_p7 }
 0x110   :  { %247 = shalt.err (!%p244_p9)
}
 0x111   :  { %140 = dma.vmem_to_hbm [thread:$0]  %s135_s12, 128, %s332_s3, [#allocation4], %s255_s22, %s255_s22, %s256_s23  }
 0x112   :  { %252 = dma.done.wait [#allocation4], 128  }
 0x113   :  { %253 = vsyncadd [#allocation4], 4294967168 }
 0x114   :  { %144 = vsyncpa [#allocation3], 1 }
 0x115   :  { %145 = vsyncpa [#allocation6], 1 }
 0x116   :  { %146 = vsyncpa [#allocation4], 1 }

</bundles_post_ra>
